<compile_context>
chip_gen: v6e
topology: v6e:2x2x1
jax: 0.10.0
libtpu: 0.0.40
codegen_flags: <defaults>
</compile_context>

<pallas_src>
import jax
import jax.numpy as jnp
from jax import lax
from jax.experimental import pallas as pl
from jax.experimental.pallas import tpu as pltpu


def _round_up(x: int, m: int) -> int:
    return ((x + m - 1) // m) * m


def _maybe_pad2d(a, rows: int, cols: int):
    """Zero-pad a 2-D array only if needed (fast path: return it untouched)."""
    r, c = a.shape
    if r == rows and c == cols:
        return a
    return jnp.pad(a, ((0, rows - r), (0, cols - c)))


def _tanh_colscale_kernel(r_ref, s_ref, acc_ref):
    """scale[j] = sum_i tanh(R[j, i]), emitted lane-dense as a (1, tn) row.

    grid = (N tiles, K tiles).  The row-sum over the K (lane) axis is done on
    the MXU by contracting against a ones vector, which lands the result with
    the output features on the lane axis -- no cross-lane relayout, and the
    per-step VPU/EUP work is just the tanh.
    """

    @pl.when(pl.program_id(1) == 0)
    def _():
        acc_ref[...] = jnp.zeros_like(acc_ref)

    t = jnp.tanh(r_ref[...].astype(jnp.float32))            # (tn, tk)
    ones = jnp.ones((8, t.shape[1]), jnp.float32)            # 8 rows: MXU-friendly
    # (8, tk) . (tn, tk)^T -> (8, tn); every row equals sum_i tanh(R[j, i]).
    acc_ref[...] += lax.dot_general(
        ones, t,
        dimension_numbers=(((1,), (1,)), ((), ())),
        preferred_element_type=jnp.float32,
    )

    @pl.when(pl.program_id(1) == pl.num_programs(1) - 1)
    def _():
        s_ref[...] = acc_ref[0:1, :]                          # (1, tn), lane-dense


def _mrr_matmul_kernel(x_ref, w_ref, s_ref, o_ref, acc_ref):
    """out = (x @ W.T) * scale; grid = (M tiles, N tiles, K tiles)."""

    @pl.when(pl.program_id(2) == 0)
    def _():
        acc_ref[...] = jnp.zeros_like(acc_ref)

    # x tile (tm, tk) contracted with W tile (tn, tk) along their last axes
    # -> (tm, tn).  W stays in its native [out, in] layout (no HBM transpose).
    acc_ref[...] += lax.dot_general(
        x_ref[...],
        w_ref[...],
        dimension_numbers=(((1,), (1,)), ((), ())),
        preferred_element_type=jnp.float32,
    )

    @pl.when(pl.program_id(2) == pl.num_programs(2) - 1)
    def _():
        # s_ref is (1, tn): lane-aligned with the output tile -> free broadcast.
        o_ref[...] = (acc_ref[...] * s_ref[...]).astype(o_ref.dtype)


def mrr_weight_bank_forward(
    x, weight_matrix, resonance_frequencies, *, tm=512, tn=512, tk=1024
):
    """Pallas implementation of MRRWeightBank.forward.

    Args:
      x:                      [batch, in_features]
      weight_matrix:          [out_features, in_features]
      resonance_frequencies:  [out_features, in_features]
    Returns:
      [batch, out_features] in x.dtype (accumulation in float32).
    """
    batch, in_features = x.shape
    out_features = weight_matrix.shape[0]
    out_dtype = x.dtype

    # torch.mm requires matching dtypes; mirror that (no-op in the common case).
    if weight_matrix.dtype != x.dtype:
        weight_matrix = weight_matrix.astype(x.dtype)

    # Sublane granularity depends on dtype packing (f32 -> 8, bf16 -> 16, i8 -> 32).
    itemsize = jnp.dtype(x.dtype).itemsize
    min_sub = 8 if itemsize >= 4 else (16 if itemsize == 2 else 32)

    # Shrink tiles for small problems while keeping TPU tiling alignment.
    tm = min(tm, _round_up(batch, min_sub))
    n128 = _round_up(out_features, 128)
    k128 = _round_up(in_features, 128)
    tn = min(tn, n128)
    tk = min(tk, k128)

    m_pad = _round_up(batch, tm)
    # Keep at least two N tiles when the batch fits a single M tile so that
    # both TensorCores on a v7x chip receive work (v5e/v6e unaffected).
    if m_pad // tm == 1 and _round_up(out_features, tn) // tn == 1 and tn > 128:
        tn = _round_up(tn // 2, 128)
    n_pad = _round_up(out_features, tn)
    k_pad = _round_up(in_features, tk)

    # Fast path: no HBM copies at all when dims already divide the tiles.
    # Otherwise zero-pad only what is needed, in the native dtype (no upcast).
    x_p = _maybe_pad2d(x, m_pad, k_pad)
    w_p = _maybe_pad2d(weight_matrix, n_pad, k_pad)

    # Kernel 1 streams R with its own (larger) K tile -- full K when it fits.
    tk_r = min(2048, k128)
    k_pad_r = _round_up(in_features, tk_r)
    r_p = _maybe_pad2d(resonance_frequencies, n_pad, k_pad_r)

    vmem_limit = 48 * 1024 * 1024  # safe on v7x (64 MiB VMEM); plenty for v5e/v6e.

    # --- Kernel 1: scale = tanh(R).sum(axis=1), lane-dense (1, n_pad). ---
    scale_row = pl.pallas_call(
        _tanh_colscale_kernel,
        out_shape=jax.ShapeDtypeStruct((1, n_pad), jnp.float32),
        grid_spec=pltpu.PrefetchScalarGridSpec(
            num_scalar_prefetch=0,
            grid=(n_pad // tn, k_pad_r // tk_r),
            in_specs=[pl.BlockSpec((tn, tk_r), lambda j, k: (j, k))],
            out_specs=pl.BlockSpec((1, tn), lambda j, k: (0, j)),
            scratch_shapes=[pltpu.VMEM((8, tn), jnp.float32)],
        ),
        compiler_params=pltpu.CompilerParams(
            dimension_semantics=("parallel", "arbitrary"),
            vmem_limit_bytes=vmem_limit,
        ),
    )(r_p)

    # --- Kernel 2: tiled matmul + per-output-column scale. ---
    out_p = pl.pallas_call(
        _mrr_matmul_kernel,
        out_shape=jax.ShapeDtypeStruct((m_pad, n_pad), out_dtype),
        grid_spec=pltpu.PrefetchScalarGridSpec(
            num_scalar_prefetch=0,
            grid=(m_pad // tm, n_pad // tn, k_pad // tk),
            in_specs=[
                pl.BlockSpec((tm, tk), lambda i, j, k: (i, k)),  # x
                pl.BlockSpec((tn, tk), lambda i, j, k: (j, k)),  # W (native layout)
                pl.BlockSpec((1, tn), lambda i, j, k: (0, j)),   # scale row
            ],
            out_specs=pl.BlockSpec((tm, tn), lambda i, j, k: (i, j)),
            scratch_shapes=[pltpu.VMEM((tm, tn), jnp.float32)],
        ),
        compiler_params=pltpu.CompilerParams(
            dimension_semantics=("parallel", "parallel", "arbitrary"),
            vmem_limit_bytes=vmem_limit,
        ),
    )(x_p, w_p, scale_row)

    if m_pad == batch and n_pad == out_features:
        return out_p
    return out_p[:batch, :out_features]


def _reference_forward(x, weight_matrix, resonance_frequencies):
    out = x @ weight_matrix.T
    freq_mod = jnp.tanh(resonance_frequencies)
    return out * freq_mod.sum(axis=1, keepdims=True).T


if __name__ == "__main__":
    # Small deterministic setup consistent with MRRWeightBank(in, out).
    batch = 8
    in_features = 32
    out_features = 64

    key = jax.random.PRNGKey(0)
    k_x, k_w, k_r = jax.random.split(key, 3)

    x = jax.random.normal(k_x, (batch, in_features), dtype=jnp.float32)
    weight_matrix = 0.1 * jax.random.normal(
        k_w, (out_features, in_features), dtype=jnp.float32
    )
    resonance_frequencies = 0.1 * jax.random.normal(
        k_r, (out_features, in_features), dtype=jnp.float32
    )
    # q_factors (= ones * 1000) is unused by the PyTorch forward; omitted.

    out = mrr_weight_bank_forward(x, weight_matrix, resonance_frequencies)
    out = jax.block_until_ready(out)

    ref = _reference_forward(x, weight_matrix, resonance_frequencies)
    assert out.shape == (batch, out_features)
    assert out.dtype == x.dtype
    assert jnp.allclose(out, ref, atol=1e-4, rtol=1e-5), "mismatch vs reference"

    print("KERNEL_OK")
</pallas_src>

<mosaic_0001>
module attributes {stable_mosaic.version = 11 : i64} {
  func.func @_tanh_colscale_kernel(%arg0: i32, %arg1: i32, %arg2: memref<128x128xf32, #tpu.memory_space<vmem>>, %arg3: memref<1x128xf32, #tpu.memory_space<vmem>>, %arg4: memref<8x128xf32, #tpu.memory_space<vmem>>) attributes {dimension_semantics = [#tpu.dimension_semantics<parallel>, #tpu.dimension_semantics<arbitrary>], iteration_bounds = array<i64: 1, 1>, scalar_prefetch = 0 : i64, scratch_operands = 1 : i64, tpu.core_type = #tpu.core_type<tc>, window_params = [{transform_indices = @transform_0, window_bounds = array<i64: 128, 128>}, {transform_indices = @transform_1, window_bounds = array<i64: 1, 128>}]} {
    %c0_i32 = arith.constant 0 : i32
    %0 = arith.cmpi eq, %arg1, %c0_i32 : i32
    %1 = arith.extui %0 : i1 to i32
    %c0_i32_0 = arith.constant 0 : i32
    %2 = arith.cmpi ne, %1, %c0_i32_0 : i32
    scf.if %2 {
      %cst_9 = arith.constant 0.000000e+00 : f32
      %13 = vector.broadcast %cst_9 : f32 to vector<8x128xf32>
      %c0_10 = arith.constant 0 : index
      %c0_11 = arith.constant 0 : index
      %14 = vector.load %arg4[%c0_10, %c0_11] : memref<8x128xf32, #tpu.memory_space<vmem>>, vector<8x128xf32>
      tpu.vector_store %arg4[%c0_10, %c0_11], %13 {strides = array<i32>} : memref<8x128xf32, #tpu.memory_space<vmem>>, vector<8x128xf32>,
    } else {
    }
    %c0 = arith.constant 0 : index
    %c0_1 = arith.constant 0 : index
    %3 = vector.load %arg2[%c0, %c0_1] : memref<128x128xf32, #tpu.memory_space<vmem>>, vector<128x128xf32>
    %4 = math.tanh %3 : vector<128x128xf32>
    %cst = arith.constant 1.000000e+00 : f32
    %5 = vector.broadcast %cst : f32 to vector<8x128xf32>
    %c0_2 = arith.constant 0 : index
    %c0_3 = arith.constant 0 : index
    %6 = vector.load %arg4[%c0_2, %c0_3] : memref<8x128xf32, #tpu.memory_space<vmem>>, vector<8x128xf32>
    %cst_4 = arith.constant dense<0.000000e+00> : vector<8x128xf32>
    %7 = tpu.matmul %5, %4, %cst_4 {dimension_numbers = #tpu.dot_dimension_numbers<[1], [1], [0], [0], [0, 0, 1, 0], [], []>} : vector<8x128xf32>, vector<128x128xf32>, vector<8x128xf32> -> vector<8x128xf32>
    %8 = arith.addf %6, %7 : vector<8x128xf32>
    %c0_5 = arith.constant 0 : index
    %c0_6 = arith.constant 0 : index
    %9 = vector.load %arg4[%c0_5, %c0_6] : memref<8x128xf32, #tpu.memory_space<vmem>>, vector<8x128xf32>
    tpu.vector_store %arg4[%c0_5, %c0_6], %8 {strides = array<i32>} : memref<8x128xf32, #tpu.memory_space<vmem>>, vector<8x128xf32>,
    %c0_i32_7 = arith.constant 0 : i32
    %10 = arith.cmpi eq, %arg1, %c0_i32_7 : i32
    %11 = arith.extui %10 : i1 to i32
    %c0_i32_8 = arith.constant 0 : i32
    %12 = arith.cmpi ne, %11, %c0_i32_8 : i32
    scf.if %12 {
      %c0_9 = arith.constant 0 : index
      %c0_10 = arith.constant 0 : index
      %13 = vector.load %arg4[%c0_9, %c0_10] : memref<8x128xf32, #tpu.memory_space<vmem>>, vector<1x128xf32>
      %c0_11 = arith.constant 0 : index
      %c0_12 = arith.constant 0 : index
      %14 = vector.load %arg3[%c0_11, %c0_12] : memref<1x128xf32, #tpu.memory_space<vmem>>, vector<1x128xf32>
      tpu.vector_store %arg3[%c0_11, %c0_12], %13 {strides = array<i32>} : memref<1x128xf32, #tpu.memory_space<vmem>>, vector<1x128xf32>,
    } else {
    }
    return
  }
  func.func @transform_0(%arg0: i32, %arg1: i32) -> (i32, i32) {
    %c0_i32 = arith.constant 0 : i32
    return %arg0, %arg1 : i32, i32
  }
  func.func @transform_1(%arg0: i32, %arg1: i32) -> (i32, i32) {
    %c0_i32 = arith.constant 0 : i32
    %c0_i32_0 = arith.constant 0 : i32
    return %c0_i32, %arg0 : i32, i32
  }
}

</mosaic_0001>

<bundles_post_ra>
// kernel: tpu_custom_call.1
= control target key start
LH: loop header
LB: loop body
LE: loop exit
PB: predicated region body
PF: predicated region fallthrough
CT: control target
= control target key end

     0   :  { %6 = vsyncpa [#allocation4], 0  ;;  %s328_s0 = inlined_call_operand.hbm [shape: f32[128,128], index: 0, kind: input, shape index: {}]   ;;  %s329_s1 = inlined_call_operand.hbm [shape: f32[1,128], index: 1, kind: output, shape index: {}]  }
   0x1   :  { %7 = vsyncpa [#allocation5], 0  ;;  %s288_s6 = smov [#allocation3]  }
   0x2   :  { %s13_s7 = sshll.u32 %s288_s6, 4  ;;  %s14_s7 = int_to_ptr.vmem [resolvable:$true] %s13_s7 }
   0x3   :  { %s252_s8 = scalar_lea.vmem %s14_s7, 2048  ;;  %p257_p1 = scmp.lt.s32.totalorder %s14_s7, %s14_s7 }
   0x4   :  { %p253_p0 = scmp.ne.s32.totalorder %s14_s7, %s252_s8  ;;  %p258_p2 = scmp.lt.s32.totalorder %s252_s8, %s252_s8 }
   0x6   :  { %p259_p3 = por %p258_p2, %p257_p1 }
   0x8   :  { %p260_p4 = pnand %p259_p3, %p253_p0 }
   0xa   :  { %263 = shalt.err (!%p260_p4)
}
   0xb   :  { %s289_s9 = smov 128   ;;  %s290_s10 = smov 8  }
   0xc   :  { %19 = dma.hbm_to_vmem [thread:$0]  %s328_s0, 2048, %s14_s7, [#allocation4], %s289_s9, %s289_s9, %s290_s10  }
   0xd   :  { %284 = dma.done.wait [#allocation4], 2048  }
   0xe   :  { %285 = vsyncadd [#allocation4], 4294965248  ;;  %v291_v0 = vmov 0.0   ;;  %vm292_vm0 = vmmov 0   ;;  %v43_v1 = vld [vmem:[#allocation3 + $0x78] sm:$0xff]  ;;  %v42_v2 = vld [vmem:[#allocation3 + $0x70] sm:$0xff] }
   0xf   :  { %170 = vmatprep.subr.mxu0 %v291_v0  ;;  %202 = vmatprep.mubr.msk.f32.mxu0 %vm292_vm0, %v291_v0  ;;  %212 = vtanh.f32 %v43_v1  ;;  %v41_v3 = vld [vmem:[#allocation3 + $0x68] sm:$0xff]  ;;  %v40_v4 = vld [vmem:[#allocation3 + $0x60] sm:$0xff]  ;;  %v39_v5 = vld [vmem:[#allocation3 + $0x58] sm:$0xff]  ;;  %v293_v33 = vmov 1.0   ;;  %s294_s0 = smov [#allocation6]  }
  0x10   :  { %214 = vtanh.f32 %v42_v2  ;;  %v38_v8 = vld [vmem:[#allocation3 + $0x50] sm:$0xff]  ;;  %v37_v10 = vld [vmem:[#allocation3 + $0x48] sm:$0xff]  ;;  %v36_v12 = vld [vmem:[#allocation3 + $0x40] sm:$0xff]  ;;  %s144_s13 = sshll.u32 %s294_s0, 4  ;;  %s145_s13 = int_to_ptr.vmem [resolvable:$true] %s144_s13 }
  0x11   :  { %216 = vtanh.f32 %v41_v3  ;;  %v35_v14 = vld [vmem:[#allocation3 + $0x38] sm:$0xff]  ;;  %v34_v16 = vld [vmem:[#allocation3 + $0x30] sm:$0xff]  ;;  %v33_v18 = vld [vmem:[#allocation3 + $0x28] sm:$0xff]  ;;  %s264_s14 = scalar_lea.vmem %s145_s13, 16  ;;  %s268_s15 = scalar_lea.vmem %s145_s13, 32 }
  0x12   :  { %218 = vtanh.f32 %v40_v4  ;;  %v32_v20 = vld [vmem:[#allocation3 + $0x20] sm:$0xff]  ;;  %v31_v22 = vld [vmem:[#allocation3 + $0x18] sm:$0xff]  ;;  %v30_v24 = vld [vmem:[#allocation3 + $0x10] sm:$0xff]  ;;  %p265_p5 = scmp.ne.s32.totalorder %s145_s13, %s264_s14  ;;  %p269_p6 = scmp.lt.s32.totalorder %s145_s13, %s145_s13 }
  0x13   :  { %220 = vtanh.f32 %v39_v5  ;;  %v29_v26 = vld [vmem:[#allocation3 + $0x8] sm:$0xff]  ;;  %v28_v28 = vld [vmem:[#allocation3] sm:$0xff]  ;;  %p270_p7 = scmp.lt.s32.totalorder %s268_s15, %s264_s14 }
  0x14   :  { %222 = vtanh.f32 %v38_v8 }
  0x15   :  { %224 = vtanh.f32 %v37_v10  ;;  %p271_p8 = por %p270_p7, %p269_p6 }
  0x16   :  { %226 = vtanh.f32 %v36_v12 }
  0x17   :  { %228 = vtanh.f32 %v35_v14  ;;  %p272_p9 = pnand %p271_p8, %p265_p5 }
  0x18   :  { %230 = vtanh.f32 %v34_v16 }
  0x19   :  { %232 = vtanh.f32 %v33_v18 }
  0x1a   :  { %234 = vtanh.f32 %v32_v20 }
  0x1b   :  { %236 = vtanh.f32 %v31_v22 }
  0x1c   :  { %v213_v6 = vpop.eup %212  ;;  %238 = vtanh.f32 %v30_v24 }
  0x1d   :  { %171 = vmatpush3.xpose.msra.mxu0 %v213_v6  ;;  %v215_v7 = vpop.eup %214  ;;  %240 = vtanh.f32 %v29_v26 }
  0x1e   :  { %172 = vmatprep.subr.mxu0 %v291_v0  ;;  %v217_v9 = vpop.eup %216  ;;  %242 = vtanh.f32 %v28_v28 }
  0x1f   :  { %v219_v11 = vpop.eup %218 }
  0x20   :  { %v221_v13 = vpop.eup %220 }
  0x21   :  { %173 = vmatpush3.xpose.msra.mxu0 %v215_v7  ;;  %v223_v15 = vpop.eup %222 }
  0x22   :  { %174 = vmatprep.subr.mxu0 %v291_v0  ;;  %v225_v17 = vpop.eup %224 }
  0x23   :  { %v227_v19 = vpop.eup %226 }
  0x24   :  { %v229_v21 = vpop.eup %228 }
  0x25   :  { %175 = vmatpush3.xpose.msra.mxu0 %v217_v9  ;;  %v231_v23 = vpop.eup %230 }
  0x26   :  { %176 = vmatprep.subr.mxu0 %v291_v0  ;;  %v233_v25 = vpop.eup %232 }
  0x27   :  { %v235_v27 = vpop.eup %234 }
  0x28   :  { %v237_v29 = vpop.eup %236 }
  0x29   :  { %177 = vmatpush3.xpose.msra.mxu0 %v219_v11  ;;  %v239_v30 = vpop.eup %238 }
  0x2a   :  { %178 = vmatprep.subr.mxu0 %v291_v0  ;;  %v241_v31 = vpop.eup %240 }
  0x2b   :  { %v243_v32 = vpop.eup %242 }
  0x2d   :  { %179 = vmatpush3.xpose.msra.mxu0 %v221_v13 }
  0x2e   :  { %180 = vmatprep.subr.mxu0 %v291_v0 }
  0x31   :  { %181 = vmatpush3.xpose.msra.mxu0 %v223_v15 }
  0x32   :  { %182 = vmatprep.subr.mxu0 %v291_v0 }
  0x35   :  { %183 = vmatpush3.xpose.msra.mxu0 %v225_v17 }
  0x36   :  { %184 = vmatprep.subr.mxu0 %v291_v0 }
  0x39   :  { %185 = vmatpush3.xpose.msra.mxu0 %v227_v19 }
  0x3a   :  { %186 = vmatprep.subr.mxu0 %v291_v0 }
  0x3d   :  { %187 = vmatpush3.xpose.msra.mxu0 %v229_v21 }
  0x3e   :  { %188 = vmatprep.subr.mxu0 %v291_v0 }
  0x41   :  { %189 = vmatpush3.xpose.msra.mxu0 %v231_v23 }
  0x42   :  { %190 = vmatprep.subr.mxu0 %v291_v0 }
  0x45   :  { %191 = vmatpush3.xpose.msra.mxu0 %v233_v25 }
  0x46   :  { %192 = vmatprep.subr.mxu0 %v291_v0 }
  0x49   :  { %193 = vmatpush3.xpose.msra.mxu0 %v235_v27 }
  0x4a   :  { %194 = vmatprep.subr.mxu0 %v291_v0 }
  0x4d   :  { %195 = vmatpush3.xpose.msra.mxu0 %v237_v29 }
  0x4e   :  { %196 = vmatprep.subr.mxu0 %v291_v0 }
  0x51   :  { %197 = vmatpush3.xpose.msra.mxu0 %v239_v30 }
  0x52   :  { %198 = vmatprep.subr.mxu0 %v291_v0 }
  0x55   :  { %199 = vmatpush3.xpose.msra.mxu0 %v241_v31 }
  0x56   :  { %200 = vmatprep.subr.mxu0 %v291_v0 }
  0x59   :  { %201 = vmatpush3.xpose.msra.mxu0 %v243_v32 }
  0x5c   :  { %203 = vmatmul.mubr.f32.vlgmr.msra.gmra.mxu0 %v293_v33 }
 0x11c   :  { %v127_v34 = vpop.f32.mrf.mxu0 }
 0x11d   :  { %132 = vst [vmem:[#allocation2] sm:$0xff] %v127_v34 }
 0x11e   :  { %v204_v35 = vpop.f32.mrf.mxu0 }
 0x124   :  { %v136_v36 = vld [vmem:[#allocation2] sm:$0x1] }
 0x125   :  { %137 = vst [vmem:[#allocation6] sm:$0x1] %v136_v36 }
 0x126   :  { %275 = shalt.err (!%p272_p9)
}
 0x127   :  { %147 = dma.vmem_to_hbm [thread:$0]  %s145_s13, 16, %s329_s1, [#allocation5]  }
 0x128   :  { %286 = dma.done.wait [#allocation5], 16  }
 0x129   :  { %287 = vsyncadd [#allocation5], 4294967280 }
 0x12a   :  { %151 = vsyncpa [#allocation4], 1 }
 0x12b   :  { %152 = vsyncpa [#allocation5], 1 }

</bundles_post_ra>
